<compile_context>
chip_gen: v6e
topology: v6e:2x2x1
jax: 0.10.0
libtpu: 0.0.40
codegen_flags: <defaults>
</compile_context>

<pallas_src>
import math

import jax
import jax.numpy as jnp
from jax.experimental import pallas as pl
from jax.experimental.pallas import tpu as pltpu  # noqa: F401  (TPU tuning hooks)

# Small, module-consistent config.
BATCH = 2
SEQ = 8
NUM_HEADS = 4
HEAD_DIM = 8
HIDDEN = NUM_HEADS * HEAD_DIM  # 32
LN_EPS = 1e-12
NEG_INF = -1e30


def splicebert_attention_kernel(
    x_ref,       # (B*S, H)    hidden_states, batch folded into rows
    wqkv_ref,    # (H, 3H)     fused, pre-transposed [Wq.T | Wk.T | Wv.T]
    bq_ref,      # (1, H)      query bias only (b_k dropped, b_v folded into bo)
    wo_ref,      # (H, H)      pre-transposed Wo.T
    bo_ref,      # (1, H)      bo + b_v @ Wo.T   (host-folded)
    gamma_ref,   # (1, H)
    beta_ref,    # (1, H)
    bias_ref,    # (B*S, B*S)  precomputed cross-batch additive mask
    o_ref,       # (B*S, H)
):
    f32 = jnp.float32
    x = x_ref[...].astype(f32)                                    # [B*S, H]

    # --- fused Q/K/V projection: one MXU matmul, weights already (in, out) ---
    qkv = jnp.dot(x, wqkv_ref[...], preferred_element_type=f32)   # [B*S, 3H]
    q_all = qkv[:, :HIDDEN] + bq_ref[...]                         # only bq needed

    bias = bias_ref[...]                                          # [B*S, B*S]
    scale = 1.0 / math.sqrt(HEAD_DIM)

    ctx_heads = []
    for h in range(NUM_HEADS):                                    # static unroll
        lo = h * HEAD_DIM
        q_h = q_all[:, lo:lo + HEAD_DIM]                          # [B*S, dH]
        k_h = qkv[:, HIDDEN + lo:HIDDEN + lo + HEAD_DIM]
        v_h = qkv[:, 2 * HIDDEN + lo:2 * HIDDEN + lo + HEAD_DIM]

        # q @ k.T without materializing a transposed copy of K.
        scores = jax.lax.dot_general(
            q_h, k_h, (((1,), (1,)), ((), ())),
            preferred_element_type=f32) * scale + bias            # [B*S, B*S]

        m = jnp.max(scores, axis=-1, keepdims=True)
        e = jnp.exp(scores - m)
        inv = pl.reciprocal(jnp.sum(e, axis=-1, keepdims=True), approx=True)
        probs = e * inv

        ctx_heads.append(jnp.dot(probs, v_h, preferred_element_type=f32))

    # Lane-concat the heads (cheap XLU/select work) -> one K=32 output matmul.
    ctx = jnp.concatenate(ctx_heads, axis=-1)                     # [B*S, H]
    out = jnp.dot(ctx, wo_ref[...], preferred_element_type=f32)   # [B*S, H]

    # --- SpliceBertSelfOutput: dense bias -> residual add -> LayerNorm ---
    resid = out + bo_ref[...] + x
    mean = jnp.mean(resid, axis=-1, keepdims=True)
    cent = resid - mean
    var = jnp.mean(cent * cent, axis=-1, keepdims=True)
    normed = cent * jax.lax.rsqrt(var + LN_EPS)
    o_ref[...] = (normed * gamma_ref[...] + beta_ref[...]).astype(o_ref.dtype)


def pack_params(params):
    """Host-side, one-time packing: pre-transpose, fuse Q/K/V, fold biases."""
    wqkv = jnp.concatenate(
        [params["wq"].T, params["wk"].T, params["wv"].T], axis=1)   # (H, 3H)
    wo_t = params["wo"].T                                            # (H, H)
    # probs rows sum to 1 => ctx = probs @ (xWv.T) + 1⊗b_v, so b_v folds
    # through Wo.T straight into bo. b_k is a per-row constant shift of the
    # scores and vanishes under softmax, so it is dropped entirely.
    bo_folded = params["bo"] + params["bv"] @ wo_t                   # (1, H)
    return {
        "wqkv": wqkv,
        "bq": params["bq"],
        "wo_t": wo_t,
        "bo": bo_folded,
        "ln_gamma": params["ln_gamma"],
        "ln_beta": params["ln_beta"],
    }


def make_cross_batch_bias(B, S):
    """Additive mask forbidding attention across batch elements (host const)."""
    seq_id = jnp.arange(B * S, dtype=jnp.int32) // S
    same = seq_id[:, None] == seq_id[None, :]
    return jnp.where(same, 0.0, NEG_INF).astype(jnp.float32)        # (B*S, B*S)


def splicebert_attention(hidden_states, packed, cross_batch_bias):
    """hidden_states: [B, S, H] float32. Returns attention_output [B, S, H]."""
    B, S, H = hidden_states.shape
    assert H == HIDDEN and S == SEQ

    # Wrapper-side layout plumbing (free): present a single dense 2-D slab.
    x2d = hidden_states.reshape(B * S, H)
    bs = B * S

    flops = (
        2 * bs * H * (3 * H)                                  # fused QKV matmul
        + NUM_HEADS * (
            2 * bs * bs * HEAD_DIM                            # scores
            + 2 * bs * bs * HEAD_DIM                          # probs @ V
        )
        + 2 * bs * H * H                                      # single ctx @ Wo.T
    )
    transcendentals = NUM_HEADS * bs * bs + NUM_HEADS * bs + bs  # exp + recip + rsqrt
    bytes_accessed = 4 * (
        2 * bs * H + H * 3 * H + H + H * H + 3 * H + bs * bs)

    out2d = pl.pallas_call(
        splicebert_attention_kernel,
        out_shape=jax.ShapeDtypeStruct((bs, H), hidden_states.dtype),
        cost_estimate=pl.CostEstimate(
            flops=int(flops),
            transcendentals=int(transcendentals),
            bytes_accessed=int(bytes_accessed),
        ),
    )(
        x2d,
        packed["wqkv"], packed["bq"],
        packed["wo_t"], packed["bo"],
        packed["ln_gamma"], packed["ln_beta"],
        cross_batch_bias,
    )
    return out2d.reshape(B, S, H)


def _reference(hidden_states, params):
    """Pure-JAX reference mirroring the PyTorch forward (eval mode)."""
    B, S, H = hidden_states.shape
    x = hidden_states
    q = x @ params["wq"].T + params["bq"][0]
    k = x @ params["wk"].T + params["bk"][0]
    v = x @ params["wv"].T + params["bv"][0]

    def split_heads(t):  # [B, S, H] -> [B, nH, S, dH]
        return t.reshape(B, S, NUM_HEADS, HEAD_DIM).transpose(0, 2, 1, 3)

    qh, kh, vh = split_heads(q), split_heads(k), split_heads(v)
    scores = jnp.einsum("bhqd,bhkd->bhqk", qh, kh) / math.sqrt(HEAD_DIM)
    probs = jax.nn.softmax(scores, axis=-1)
    ctx = jnp.einsum("bhqk,bhkd->bhqd", probs, vh)
    ctx = ctx.transpose(0, 2, 1, 3).reshape(B, S, H)

    out = ctx @ params["wo"].T + params["bo"][0]
    resid = out + x
    mean = jnp.mean(resid, axis=-1, keepdims=True)
    var = jnp.mean((resid - mean) ** 2, axis=-1, keepdims=True)
    normed = (resid - mean) / jnp.sqrt(var + LN_EPS)
    return normed * params["ln_gamma"][0] + params["ln_beta"][0]


def make_params(key):
    keys = jax.random.split(key, 10)
    s = 0.05
    H = HIDDEN
    return {
        "wq": jax.random.normal(keys[0], (H, H), jnp.float32) * s,
        "bq": jax.random.normal(keys[1], (1, H), jnp.float32) * s,
        "wk": jax.random.normal(keys[2], (H, H), jnp.float32) * s,
        "bk": jax.random.normal(keys[3], (1, H), jnp.float32) * s,
        "wv": jax.random.normal(keys[4], (H, H), jnp.float32) * s,
        "bv": jax.random.normal(keys[5], (1, H), jnp.float32) * s,
        "wo": jax.random.normal(keys[6], (H, H), jnp.float32) * s,
        "bo": jax.random.normal(keys[7], (1, H), jnp.float32) * s,
        "ln_gamma": jnp.ones((1, H), jnp.float32),
        "ln_beta": jnp.zeros((1, H), jnp.float32),
    }


if __name__ == "__main__":
    key = jax.random.PRNGKey(0)
    pkey, xkey = jax.random.split(key)
    params = make_params(pkey)
    hidden_states = jax.random.normal(xkey, (BATCH, SEQ, HIDDEN), jnp.float32)

    packed = pack_params(params)
    cross_batch_bias = make_cross_batch_bias(BATCH, SEQ)

    out = splicebert_attention(hidden_states, packed, cross_batch_bias)
    out = jax.block_until_ready(out)

    ref = _reference(hidden_states, params)
    assert out.shape == (BATCH, SEQ, HIDDEN)
    # Tolerance relaxed (1e-3) for the approx EUP reciprocal + host bias folds.
    assert jnp.allclose(out, ref, atol=1e-3, rtol=1e-3), float(
        jnp.max(jnp.abs(out - ref)))
    print("KERNEL_OK")
</pallas_src>

<mosaic_0001>
module attributes {stable_mosaic.version = 11 : i64} {
  func.func @splicebert_attention_kernel(%arg0: memref<16x32xf32, #tpu.memory_space<vmem>>, %arg1: memref<32x96xf32, #tpu.memory_space<vmem>>, %arg2: memref<1x32xf32, #tpu.memory_space<vmem>>, %arg3: memref<32x32xf32, #tpu.memory_space<vmem>>, %arg4: memref<1x32xf32, #tpu.memory_space<vmem>>, %arg5: memref<1x32xf32, #tpu.memory_space<vmem>>, %arg6: memref<1x32xf32, #tpu.memory_space<vmem>>, %arg7: memref<16x16xf32, #tpu.memory_space<vmem>>, %arg8: memref<16x32xf32, #tpu.memory_space<vmem>>) attributes {dimension_semantics = [], scalar_prefetch = 0 : i64, scratch_operands = 0 : i64, tpu.core_type = #tpu.core_type<tc>} {
    %c0 = arith.constant 0 : index
    %c0_0 = arith.constant 0 : index
    %0 = vector.load %arg0[%c0, %c0_0] : memref<16x32xf32, #tpu.memory_space<vmem>>, vector<16x32xf32>
    %c0_1 = arith.constant 0 : index
    %c0_2 = arith.constant 0 : index
    %1 = vector.load %arg1[%c0_1, %c0_2] : memref<32x96xf32, #tpu.memory_space<vmem>>, vector<32x96xf32>
    %cst = arith.constant dense<0.000000e+00> : vector<16x96xf32>
    %2 = tpu.matmul %0, %1, %cst {dimension_numbers = #tpu.dot_dimension_numbers<[1], [0], [0], [1], [0, 0, 1, 1], [], []>} : vector<16x32xf32>, vector<32x96xf32>, vector<16x96xf32> -> vector<16x96xf32>
    %3 = vector.extract_strided_slice %2 {offsets = [0, 0], sizes = [16, 32], strides = [1, 1]} : vector<16x96xf32> to vector<16x32xf32>
    %c0_3 = arith.constant 0 : index
    %c0_4 = arith.constant 0 : index
    %4 = vector.load %arg2[%c0_3, %c0_4] : memref<1x32xf32, #tpu.memory_space<vmem>>, vector<1x32xf32>
    %5 = vector.broadcast %4 : vector<1x32xf32> to vector<16x32xf32>
    %6 = arith.addf %3, %5 : vector<16x32xf32>
    %c0_5 = arith.constant 0 : index
    %c0_6 = arith.constant 0 : index
    %7 = vector.load %arg7[%c0_5, %c0_6] : memref<16x16xf32, #tpu.memory_space<vmem>>, vector<16x16xf32>
    %8 = vector.extract_strided_slice %6 {offsets = [0, 0], sizes = [16, 8], strides = [1, 1]} : vector<16x32xf32> to vector<16x8xf32>
    %9 = vector.extract_strided_slice %2 {offsets = [0, 32], sizes = [16, 8], strides = [1, 1]} : vector<16x96xf32> to vector<16x8xf32>
    %10 = vector.extract_strided_slice %2 {offsets = [0, 64], sizes = [16, 8], strides = [1, 1]} : vector<16x96xf32> to vector<16x8xf32>
    %cst_7 = arith.constant dense<0.000000e+00> : vector<16x16xf32>
    %11 = tpu.matmul %8, %9, %cst_7 {dimension_numbers = #tpu.dot_dimension_numbers<[1], [1], [0], [0], [0, 0, 1, 0], [], []>} : vector<16x8xf32>, vector<16x8xf32>, vector<16x16xf32> -> vector<16x16xf32>
    %cst_8 = arith.constant 0.353553385 : f32
    %12 = vector.broadcast %cst_8 : f32 to vector<16x16xf32>
    %13 = arith.mulf %11, %12 : vector<16x16xf32>
    %14 = arith.addf %13, %7 : vector<16x16xf32>
    %cst_9 = arith.constant dense<0xFF800000> : vector<16xf32>
    %15 = vector.multi_reduction <maximumf>, %14, %cst_9 [1] : vector<16x16xf32> to vector<16xf32>
    %16 = vector.shape_cast %15 : vector<16xf32> to vector<16x1xf32>
    %17 = vector.broadcast %16 : vector<16x1xf32> to vector<16x16xf32>
    %18 = arith.subf %14, %17 : vector<16x16xf32>
    %19 = math.exp %18 : vector<16x16xf32>
    %cst_10 = arith.constant dense<0.000000e+00> : vector<16xf32>
    %20 = vector.multi_reduction <add>, %19, %cst_10 [1] : vector<16x16xf32> to vector<16xf32>
    %21 = vector.shape_cast %20 : vector<16xf32> to vector<16x1xf32>
    %22 = tpu.reciprocal %21 {approx = true} : vector<16x1xf32> -> vector<16x1xf32>
    %23 = vector.broadcast %22 : vector<16x1xf32> to vector<16x16xf32>
    %24 = arith.mulf %19, %23 : vector<16x16xf32>
    %cst_11 = arith.constant dense<0.000000e+00> : vector<16x8xf32>
    %25 = tpu.matmul %24, %10, %cst_11 {dimension_numbers = #tpu.dot_dimension_numbers<[1], [0], [0], [1], [0, 0, 1, 1], [], []>} : vector<16x16xf32>, vector<16x8xf32>, vector<16x8xf32> -> vector<16x8xf32>
    %26 = vector.extract_strided_slice %6 {offsets = [0, 8], sizes = [16, 8], strides = [1, 1]} : vector<16x32xf32> to vector<16x8xf32>
    %27 = vector.extract_strided_slice %2 {offsets = [0, 40], sizes = [16, 8], strides = [1, 1]} : vector<16x96xf32> to vector<16x8xf32>
    %28 = vector.extract_strided_slice %2 {offsets = [0, 72], sizes = [16, 8], strides = [1, 1]} : vector<16x96xf32> to vector<16x8xf32>
    %cst_12 = arith.constant dense<0.000000e+00> : vector<16x16xf32>
    %29 = tpu.matmul %26, %27, %cst_12 {dimension_numbers = #tpu.dot_dimension_numbers<[1], [1], [0], [0], [0, 0, 1, 0], [], []>} : vector<16x8xf32>, vector<16x8xf32>, vector<16x16xf32> -> vector<16x16xf32>
    %cst_13 = arith.constant 0.353553385 : f32
    %30 = vector.broadcast %cst_13 : f32 to vector<16x16xf32>
    %31 = arith.mulf %29, %30 : vector<16x16xf32>
    %32 = arith.addf %31, %7 : vector<16x16xf32>
    %cst_14 = arith.constant dense<0xFF800000> : vector<16xf32>
    %33 = vector.multi_reduction <maximumf>, %32, %cst_14 [1] : vector<16x16xf32> to vector<16xf32>
    %34 = vector.shape_cast %33 : vector<16xf32> to vector<16x1xf32>
    %35 = vector.broadcast %34 : vector<16x1xf32> to vector<16x16xf32>
    %36 = arith.subf %32, %35 : vector<16x16xf32>
    %37 = math.exp %36 : vector<16x16xf32>
    %cst_15 = arith.constant dense<0.000000e+00> : vector<16xf32>
    %38 = vector.multi_reduction <add>, %37, %cst_15 [1] : vector<16x16xf32> to vector<16xf32>
    %39 = vector.shape_cast %38 : vector<16xf32> to vector<16x1xf32>
    %40 = tpu.reciprocal %39 {approx = true} : vector<16x1xf32> -> vector<16x1xf32>
    %41 = vector.broadcast %40 : vector<16x1xf32> to vector<16x16xf32>
    %42 = arith.mulf %37, %41 : vector<16x16xf32>
    %cst_16 = arith.constant dense<0.000000e+00> : vector<16x8xf32>
    %43 = tpu.matmul %42, %28, %cst_16 {dimension_numbers = #tpu.dot_dimension_numbers<[1], [0], [0], [1], [0, 0, 1, 1], [], []>} : vector<16x16xf32>, vector<16x8xf32>, vector<16x8xf32> -> vector<16x8xf32>
    %44 = vector.extract_strided_slice %6 {offsets = [0, 16], sizes = [16, 8], strides = [1, 1]} : vector<16x32xf32> to vector<16x8xf32>
    %45 = vector.extract_strided_slice %2 {offsets = [0, 48], sizes = [16, 8], strides = [1, 1]} : vector<16x96xf32> to vector<16x8xf32>
    %46 = vector.extract_strided_slice %2 {offsets = [0, 80], sizes = [16, 8], strides = [1, 1]} : vector<16x96xf32> to vector<16x8xf32>
    %cst_17 = arith.constant dense<0.000000e+00> : vector<16x16xf32>
    %47 = tpu.matmul %44, %45, %cst_17 {dimension_numbers = #tpu.dot_dimension_numbers<[1], [1], [0], [0], [0, 0, 1, 0], [], []>} : vector<16x8xf32>, vector<16x8xf32>, vector<16x16xf32> -> vector<16x16xf32>
    %cst_18 = arith.constant 0.353553385 : f32
    %48 = vector.broadcast %cst_18 : f32 to vector<16x16xf32>
    %49 = arith.mulf %47, %48 : vector<16x16xf32>
    %50 = arith.addf %49, %7 : vector<16x16xf32>
    %cst_19 = arith.constant dense<0xFF800000> : vector<16xf32>
    %51 = vector.multi_reduction <maximumf>, %50, %cst_19 [1] : vector<16x16xf32> to vector<16xf32>
    %52 = vector.shape_cast %51 : vector<16xf32> to vector<16x1xf32>
    %53 = vector.broadcast %52 : vector<16x1xf32> to vector<16x16xf32>
    %54 = arith.subf %50, %53 : vector<16x16xf32>
    %55 = math.exp %54 : vector<16x16xf32>
    %cst_20 = arith.constant dense<0.000000e+00> : vector<16xf32>
    %56 = vector.multi_reduction <add>, %55, %cst_20 [1] : vector<16x16xf32> to vector<16xf32>
    %57 = vector.shape_cast %56 : vector<16xf32> to vector<16x1xf32>
    %58 = tpu.reciprocal %57 {approx = true} : vector<16x1xf32> -> vector<16x1xf32>
    %59 = vector.broadcast %58 : vector<16x1xf32> to vector<16x16xf32>
    %60 = arith.mulf %55, %59 : vector<16x16xf32>
    %cst_21 = arith.constant dense<0.000000e+00> : vector<16x8xf32>
    %61 = tpu.matmul %60, %46, %cst_21 {dimension_numbers = #tpu.dot_dimension_numbers<[1], [0], [0], [1], [0, 0, 1, 1], [], []>} : vector<16x16xf32>, vector<16x8xf32>, vector<16x8xf32> -> vector<16x8xf32>
    %62 = vector.extract_strided_slice %6 {offsets = [0, 24], sizes = [16, 8], strides = [1, 1]} : vector<16x32xf32> to vector<16x8xf32>
    %63 = vector.extract_strided_slice %2 {offsets = [0, 56], sizes = [16, 8], strides = [1, 1]} : vector<16x96xf32> to vector<16x8xf32>
    %64 = vector.extract_strided_slice %2 {offsets = [0, 88], sizes = [16, 8], strides = [1, 1]} : vector<16x96xf32> to vector<16x8xf32>
    %cst_22 = arith.constant dense<0.000000e+00> : vector<16x16xf32>
    %65 = tpu.matmul %62, %63, %cst_22 {dimension_numbers = #tpu.dot_dimension_numbers<[1], [1], [0], [0], [0, 0, 1, 0], [], []>} : vector<16x8xf32>, vector<16x8xf32>, vector<16x16xf32> -> vector<16x16xf32>
    %cst_23 = arith.constant 0.353553385 : f32
    %66 = vector.broadcast %cst_23 : f32 to vector<16x16xf32>
    %67 = arith.mulf %65, %66 : vector<16x16xf32>
    %68 = arith.addf %67, %7 : vector<16x16xf32>
    %cst_24 = arith.constant dense<0xFF800000> : vector<16xf32>
    %69 = vector.multi_reduction <maximumf>, %68, %cst_24 [1] : vector<16x16xf32> to vector<16xf32>
    %70 = vector.shape_cast %69 : vector<16xf32> to vector<16x1xf32>
    %71 = vector.broadcast %70 : vector<16x1xf32> to vector<16x16xf32>
    %72 = arith.subf %68, %71 : vector<16x16xf32>
    %73 = math.exp %72 : vector<16x16xf32>
    %cst_25 = arith.constant dense<0.000000e+00> : vector<16xf32>
    %74 = vector.multi_reduction <add>, %73, %cst_25 [1] : vector<16x16xf32> to vector<16xf32>
    %75 = vector.shape_cast %74 : vector<16xf32> to vector<16x1xf32>
    %76 = tpu.reciprocal %75 {approx = true} : vector<16x1xf32> -> vector<16x1xf32>
    %77 = vector.broadcast %76 : vector<16x1xf32> to vector<16x16xf32>
    %78 = arith.mulf %73, %77 : vector<16x16xf32>
    %cst_26 = arith.constant dense<0.000000e+00> : vector<16x8xf32>
    %79 = tpu.matmul %78, %64, %cst_26 {dimension_numbers = #tpu.dot_dimension_numbers<[1], [0], [0], [1], [0, 0, 1, 1], [], []>} : vector<16x16xf32>, vector<16x8xf32>, vector<16x8xf32> -> vector<16x8xf32>
    %80 = tpu.concatenate %25, %43, %61, %79 in 1 : vector<16x8xf32>, vector<16x8xf32>, vector<16x8xf32>, vector<16x8xf32> -> vector<16x32xf32>
    %c0_27 = arith.constant 0 : index
    %c0_28 = arith.constant 0 : index
    %81 = vector.load %arg3[%c0_27, %c0_28] : memref<32x32xf32, #tpu.memory_space<vmem>>, vector<32x32xf32>
    %cst_29 = arith.constant dense<0.000000e+00> : vector<16x32xf32>
    %82 = tpu.matmul %80, %81, %cst_29 {dimension_numbers = #tpu.dot_dimension_numbers<[1], [0], [0], [1], [0, 0, 1, 1], [], []>} : vector<16x32xf32>, vector<32x32xf32>, vector<16x32xf32> -> vector<16x32xf32>
    %c0_30 = arith.constant 0 : index
    %c0_31 = arith.constant 0 : index
    %83 = vector.load %arg4[%c0_30, %c0_31] : memref<1x32xf32, #tpu.memory_space<vmem>>, vector<1x32xf32>
    %84 = vector.broadcast %83 : vector<1x32xf32> to vector<16x32xf32>
    %85 = arith.addf %82, %84 : vector<16x32xf32>
    %86 = arith.addf %85, %0 : vector<16x32xf32>
    %cst_32 = arith.constant dense<0.000000e+00> : vector<16xf32>
    %87 = vector.multi_reduction <add>, %86, %cst_32 [1] : vector<16x32xf32> to vector<16xf32>
    %88 = vector.shape_cast %87 : vector<16xf32> to vector<16x1xf32>
    %cst_33 = arith.constant 3.200000e+01 : f32
    %89 = vector.broadcast %cst_33 : f32 to vector<16x1xf32>
    %90 = arith.divf %88, %89 : vector<16x1xf32>
    %91 = vector.broadcast %90 : vector<16x1xf32> to vector<16x32xf32>
    %92 = arith.subf %86, %91 : vector<16x32xf32>
    %93 = arith.mulf %92, %92 : vector<16x32xf32>
    %cst_34 = arith.constant dense<0.000000e+00> : vector<16xf32>
    %94 = vector.multi_reduction <add>, %93, %cst_34 [1] : vector<16x32xf32> to vector<16xf32>
    %95 = vector.shape_cast %94 : vector<16xf32> to vector<16x1xf32>
    %cst_35 = arith.constant 3.200000e+01 : f32
    %96 = vector.broadcast %cst_35 : f32 to vector<16x1xf32>
    %97 = arith.divf %95, %96 : vector<16x1xf32>
    %cst_36 = arith.constant 9.99999996E-13 : f32
    %98 = vector.broadcast %cst_36 : f32 to vector<16x1xf32>
    %99 = arith.addf %97, %98 : vector<16x1xf32>
    %100 = math.rsqrt %99 : vector<16x1xf32>
    %101 = vector.broadcast %100 : vector<16x1xf32> to vector<16x32xf32>
    %102 = arith.mulf %92, %101 : vector<16x32xf32>
    %c0_37 = arith.constant 0 : index
    %c0_38 = arith.constant 0 : index
    %103 = vector.load %arg5[%c0_37, %c0_38] : memref<1x32xf32, #tpu.memory_space<vmem>>, vector<1x32xf32>
    %104 = vector.broadcast %103 : vector<1x32xf32> to vector<16x32xf32>
    %105 = arith.mulf %102, %104 : vector<16x32xf32>
    %c0_39 = arith.constant 0 : index
    %c0_40 = arith.constant 0 : index
    %106 = vector.load %arg6[%c0_39, %c0_40] : memref<1x32xf32, #tpu.memory_space<vmem>>, vector<1x32xf32>
    %107 = vector.broadcast %106 : vector<1x32xf32> to vector<16x32xf32>
    %108 = arith.addf %105, %107 : vector<16x32xf32>
    %c0_41 = arith.constant 0 : index
    %c0_42 = arith.constant 0 : index
    %109 = vector.load %arg8[%c0_41, %c0_42] : memref<16x32xf32, #tpu.memory_space<vmem>>, vector<16x32xf32>
    tpu.vector_store %arg8[%c0_41, %c0_42], %108 {strides = array<i32>} : memref<16x32xf32, #tpu.memory_space<vmem>>, vector<16x32xf32>,
    return
  }
}

</mosaic_0001>

<bundles_post_ra>
// kernel: tpu_custom_call.1
= control target key start
LH: loop header
LB: loop body
LE: loop exit
PB: predicated region body
PF: predicated region fallthrough
CT: control target
= control target key end

     0   :  { %13 = vsyncpa [#allocation3], 0  ;;  %s1748_s0 = inlined_call_operand.hbm [shape: f32[16,32], index: 0, kind: input, shape index: {}]   ;;  %s1749_s1 = inlined_call_operand.hbm [shape: f32[32,96], index: 1, kind: input, shape index: {}]   ;;  %s1750_s2 = inlined_call_operand.vmem [shape: f32[1,32], index: 2, kind: input, shape index: {}]   ;;  %s1751_s3 = inlined_call_operand.hbm [shape: f32[32,32], index: 3, kind: input, shape index: {}]   ;;  %s1752_s4 = inlined_call_operand.vmem [shape: f32[1,32], index: 4, kind: input, shape index: {}]   ;;  %s1753_s5 = inlined_call_operand.vmem [shape: f32[1,32], index: 5, kind: input, shape index: {}]   ;;  %s1754_s6 = inlined_call_operand.vmem [shape: f32[1,32], index: 6, kind: input, shape index: {}]   ;;  %s1755_s7 = inlined_call_operand.hbm [shape: f32[16,16], index: 7, kind: input, shape index: {}]   ;;  %s1756_s8 = inlined_call_operand.hbm [shape: f32[16,32], index: 8, kind: output, shape index: {}]  }
   0x1   :  { %14 = vsyncpa [#allocation6], 0 }
   0x2   :  { %15 = vsyncpa [#allocation9], 0 }
   0x3   :  { %16 = vsyncpa [#allocation4], 0  ;;  %s1511_s27 = smov [#allocation5]   ;;  %s1512_s29 = smov [#allocation2]  }
   0x4   :  { %s34_s28 = sshll.u32 %s1511_s27, 4  ;;  %s22_s30 = sshll.u32 %s1512_s29, 4  ;;  %s35_s28 = int_to_ptr.vmem [resolvable:$true] %s34_s28  ;;  %s23_s30 = int_to_ptr.vmem [resolvable:$true] %s22_s30 }
   0x5   :  { %s1411_s9 = scalar_lea.vmem %s35_s28, 512  ;;  %p1416_p1 = scmp.lt.s32.totalorder %s35_s28, %s35_s28 }
   0x6   :  { %p1412_p0 = scmp.ne.s32.totalorder %s35_s28, %s1411_s9  ;;  %p1417_p2 = scmp.lt.s32.totalorder %s1411_s9, %s1411_s9 }
   0x8   :  { %p1418_p3 = por %p1417_p2, %p1416_p1 }
   0xa   :  { %p1419_p4 = pnand %p1418_p3, %p1412_p0 }
   0xc   :  { %1422 = shalt.err (!%p1419_p4)
}
   0xd   :  { %s1513_s10 = smov 128   ;;  %s1514_s11 = smov 8  }
   0xe   :  { %40 = dma.hbm_to_vmem [thread:$0]  %s1749_s1, 512, %s35_s28, [#allocation6], %s1513_s10, %s1513_s10, %s1514_s11  }
   0xf   :  { %s1431_s14 = scalar_lea.vmem %s23_s30, 256  ;;  %p1436_p6 = scmp.lt.s32.totalorder %s23_s30, %s23_s30 }
  0x10   :  { %p1432_p5 = scmp.ne.s32.totalorder %s23_s30, %s1431_s14  ;;  %p1437_p7 = scmp.lt.s32.totalorder %s1431_s14, %s1431_s14 }
  0x12   :  { %p1438_p8 = por %p1437_p7, %p1436_p6 }
  0x14   :  { %p1439_p9 = pnand %p1438_p8, %p1432_p5 }
  0x16   :  { %1442 = shalt.err (!%p1439_p9)
}
  0x17   :  { %28 = dma.hbm_to_vmem [thread:$0]  %s1748_s0, 256, %s23_s30, [#allocation3], %s1513_s10, %s1513_s10, %s1514_s11  }
  0x18   :  { %s1515_s17 = smov [#allocation7]   ;;  %s1516_s19 = smov [#allocation8]  }
  0x19   :  { %s48_s18 = sshll.u32 %s1515_s17, 4  ;;  %s66_s20 = sshll.u32 %s1516_s19, 4  ;;  %s49_s18 = int_to_ptr.vmem [resolvable:$true] %s48_s18  ;;  %s67_s20 = int_to_ptr.vmem [resolvable:$true] %s66_s20 }
  0x1a   :  { %s1451_s1 = scalar_lea.vmem %s49_s18, 512  ;;  %p1456_p11 = scmp.lt.s32.totalorder %s49_s18, %s49_s18 }
  0x1b   :  { %p1452_p10 = scmp.ne.s32.totalorder %s49_s18, %s1451_s1  ;;  %p1457_p12 = scmp.lt.s32.totalorder %s1451_s1, %s1451_s1 }
  0x1d   :  { %p1458_p13 = por %p1457_p12, %p1456_p11 }
  0x1f   :  { %p1459_p0 = pnand %p1458_p13, %p1452_p10 }
  0x21   :  { %1462 = shalt.err (!%p1459_p0)
}
  0x22   :  { %54 = dma.hbm_to_vmem [thread:$0]  %s1751_s3, 512, %s49_s18, [#allocation6], %s1513_s10, %s1513_s10, %s1514_s11  }
  0x23   :  { %s1471_s0 = scalar_lea.vmem %s67_s20, 256  ;;  %p1476_p2 = scmp.lt.s32.totalorder %s67_s20, %s67_s20 }
  0x24   :  { %p1472_p1 = scmp.ne.s32.totalorder %s67_s20, %s1471_s0  ;;  %p1477_p3 = scmp.lt.s32.totalorder %s1471_s0, %s1471_s0 }
  0x26   :  { %p1478_p4 = por %p1477_p3, %p1476_p2 }
  0x28   :  { %p1479_p5 = pnand %p1478_p4, %p1472_p1 }
  0x2a   :  { %1482 = shalt.err (!%p1479_p5)
}
  0x2b   :  { %72 = dma.hbm_to_vmem [thread:$0]  %s1755_s7, 256, %s67_s20, [#allocation9], %s1513_s10, %s1513_s10, %s1514_s11  }
  0x2c   :  { %1503 = dma.done.wait [#allocation3], 256  }
  0x2d   :  { %1504 = vsyncadd [#allocation3], 4294967040 }
  0x2e   :  { %1505 = dma.done.wait [#allocation6], 1024  }
  0x2f   :  { %1506 = vsyncadd [#allocation6], 4294966272 }
  0x30   :  { %1507 = dma.done.wait [#allocation9], 256  }
  0x31   :  { %1508 = vsyncadd [#allocation9], 4294967040  ;;  %vm91_vm0 = vcmask 261120   ;;  %v90_v0 = vld [vmem:[#allocation5 + $0x18] sm:$0xff]  ;;  %v89_v1 = vld [vmem:[#allocation5 + $0x10] sm:$0xff]  ;;  %s1517_s3 = smov 96  }
  0x32   :  { %1269 = vmatprep.subr.mxu0 %v90_v0  ;;  %v1600_v2 = vld [vmem:[#allocation2] sm:$0xff]  ;;  %v88_v3 = vld [vmem:[#allocation5 + $0x8] sm:$0xff]  ;;  %v87_v4 = vld [vmem:[#allocation5] sm:$0xff]  ;;  %vm190_vm1 = vcmask 64512   ;;  %vm280_vm2 = vcmask 130048   ;;  %s1519_s26 = smov 120  }
  0x33   :  { %1270 = vmatpush3.msra.mxu0 %v90_v0  ;;  %1277 = vmatprep.mubr.msk.f32.mxu0 %vm91_vm0, %v1600_v2  ;;  %v1604_v5 = vld [vmem:[#allocation2 + $0x8] sm:$0xff]  ;;  %v1195_v8 = vld [vmem:[%s1750_s2] ss:$0 sm:$0xff]  ;;  %v1631_v15 = vld [vmem:[#allocation8] sm:$0xff]  ;;  %s1518_s2 = smov 64   ;;  %s1520_s27 = smov 88  }
  0x34   :  { %1271 = vmatprep.subr.mxu0 %v89_v1  ;;  %v1633_v18 = vld [vmem:[#allocation8 + $0x8] sm:$0xff]  ;;  %s1521_s28 = smov 56   ;;  %s1522_s29 = smov 80   ;;  %vm1030_vm3 = vcmask 195584  }
  0x35   :  { %1272 = vmatpush3.msra.mxu0 %v89_v1  ;;  %s1523_s30 = smov 112   ;;  %s1524_s9 = smov 48  }
  0x36   :  { %1273 = vmatprep.subr.mxu0 %v88_v3  ;;  %s1525_s12 = smov 72   ;;  %s1526_s13 = smov 104  }
  0x37   :  { %1274 = vmatpush3.msra.mxu0 %v88_v3  ;;  %s1527_s14 = smov 40   ;;  %s1528_s15 = smov 16  }
  0x38   :  { %1275 = vmatprep.subr.mxu0 %v87_v4  ;;  %s1529_s16 = smov 24   ;;  %s1530_s21 = smov [#allocation10]  }
  0x39   :  { %1276 = vmatpush3.msra.mxu0 %v87_v4  ;;  %s1179_s22 = sshll.u32 %s1530_s21, 4  ;;  %s1180_s22 = int_to_ptr.vmem [resolvable:$true] %s1179_s22 }
  0x3a   :  { %1278 = vmatmul.mubr.msk.f32.vlgmr.msra.gmra.mxu0 %vm91_vm0, %v1604_v5  ;;  %s1483_s0 = scalar_lea.vmem %s1180_s22, 256  ;;  %p1488_p7 = scmp.lt.s32.totalorder %s1180_s22, %s1180_s22 }
  0x3b   :  { %p1484_p6 = scmp.ne.s32.totalorder %s1180_s22, %s1483_s0  ;;  %p1489_p8 = scmp.lt.s32.totalorder %s1483_s0, %s1483_s0 }
  0x3d   :  { %p1490_p9 = por %p1489_p8, %p1488_p7 }
  0x3f   :  { %p1491_p10 = pnand %p1490_p9, %p1484_p6 }
  0xfa   :  { %v1608_v6 = vpop.f32.mrf.mxu0 }
  0xfb   :  { %188 = vrot.lane.b32.xlu0 %v1608_v6, %s1517_s3  ;;  %v1627_v12 = vadd.f32 %v1608_v6, %v1195_v8 }
  0xfc   :  { %v1611_v7 = vpop.f32.mrf.mxu0 }
  0xfd   :  { %v1617_v9 = vadd.f32 %v1195_v8, %v1611_v7 }
  0xff   :  { %186 = vrot.lane.b32.xlu0 %v1611_v7, %s1517_s3  ;;  %1284 = vmatprep.mubr.msk.f32.mxu1 %vm190_vm1, %v1617_v9 }
 0x16d   :  { %v189_v10 = vpop.permute.xlu0 %188 }
 0x16e   :  { %1280 = vmatprep.subr.msk.mxu1 %vm190_vm1, %v189_v10 }
 0x16f   :  { %1281 = vmatpush3.xpose.msk.msra.mxu1 %vm190_vm1, %v189_v10 }
 0x171   :  { %v187_v11 = vpop.permute.xlu0 %186 }
 0x172   :  { %1282 = vmatprep.subr.msk.mxu1 %vm190_vm1, %v187_v11 }
 0x173   :  { %1283 = vmatpush3.xpose.msk.msra.mxu1 %vm190_vm1, %v187_v11 }
 0x176   :  { %1285 = vmatmul.mubr.msk.f32.vlgmr.msra.gmra.mxu1 %vm190_vm1, %v1627_v12 }
 0x236   :  { %v1286_v13 = vpop.f32.mrf.mxu1 }
 0x237   :  { %v277_v16 = vmul.f32 0.35355338, %v1286_v13 }
 0x238   :  { %v267_v14 = vpop.f32.mrf.mxu1 }
 0x239   :  { %v276_v17 = vmul.f32 0.35355338, %v267_v14  ;;  %v279_v21 = vadd.f32 %v277_v16, %v1633_v18 }
 0x23b   :  { %v278_v19 = vadd.f32 %v276_v17, %v1631_v15  ;;  %v284_v22 = vsel %vm280_vm2, %v279_v21, -inf }
 0x23d   :  { %v281_v20 = vsel %vm280_vm2, %v278_v19, -inf }
 0x23e   :  { %282 = vmax.xlane.f32.xlu1 %v281_v20 }
 0x242   :  { %285 = vmax.xlane.f32.xlu1 %v284_v22 }
 0x2c7   :  { %v283_v23 = vpop.xlane.xlu1 %282 }
 0x2c8   :  { %v287_v24 = vsub.f32 %v278_v19, %v283_v23 }
 0x2ca   :  { %v289_v25 = vmul.f32 1.442695, %v287_v24 }
 0x2cb   :  { %v286_v26 = vpop.xlane.xlu1 %285 }
 0x2cc   :  { %1367 = vpow2.f32 %v289_v25  ;;  %v288_v27 = vsub.f32 %v279_v21, %v286_v26 }
 0x2ce   :  { %v291_v28 = vmul.f32 1.442695, %v288_v27 }
 0x2d0   :  { %1369 = vpow2.f32 %v291_v28 }
 0x2d9   :  { %v1368_v29 = vpop.eup %1367 }
 0x2da   :  { %v293_v30 = vsel %vm280_vm2, %v1368_v29, 0.0 }
 0x2db   :  { %294 = vadd.xlane.f32.xlu0 %v293_v30 }
 0x2dd   :  { %v1370_v31 = vpop.eup %1369 }
 0x2de   :  { %v296_v32 = vsel %vm280_vm2, %v1370_v31, 0.0 }
 0x2df   :  { %297 = vadd.xlane.f32.xlu1 %v296_v32 }
 0x2f0   :  { %305 = vrot.lane.b32.xlu1 %v1608_v6, %s1518_s2 }
 0x2f1   :  { %390 = vrot.lane.b32.xlu0 %v1617_v9, %s1519_s26 }
 0x2f4   :  { %303 = vrot.lane.b32.xlu1 %v1611_v7, %s1518_s2 }
 0x2f8   :  { %396 = vrot.lane.b32.xlu1 %v1608_v6, %s1520_s27 }
 0x2fc   :  { %394 = vrot.lane.b32.xlu1 %v1611_v7, %s1520_s27 }
 0x300   :  { %392 = vrot.lane.b32.xlu1 %v1627_v12, %s1519_s26 }
 0x364   :  { %v295_v33 = vpop.xlane.xlu0 %294 }
 0x365   :  { %1371 = vrcp.f32 %v295_v33 }
 0x368   :  { %v298_v34 = vpop.xlane.xlu1 %297  ;;  %v391_v43 = vpop.permute.xlu0 %390 }
 0x369   :  { %1373 = vrcp.f32 %v298_v34 }
 0x36c   :  { %v306_v35 = vpop.permute.xlu1 %305 }
 0x36d   :  { %1287 = vmatprep.subr.mxu1 %v306_v35 }
 0x36e   :  { %1288 = vmatpush3.msra.mxu1 %v306_v35 }
 0x370   :  { %v304_v36 = vpop.permute.xlu1 %303 }
 0x371   :  { %1289 = vmatprep.subr.mxu1 %v304_v36 }
 0x372   :  { %v1372_v37 = vpop.eup %1371  ;;  %1290 = vmatpush3.msra.mxu1 %v304_v36 }
 0x373   :  { %v301_v38 = vmul.f32 %v1372_v37, %v1368_v29 }
 0x374   :  { %v397_v39 = vpop.permute.xlu1 %396 }
 0x375   :  { %1291 = vmatprep.mubr.msk.f32.mxu1 %vm280_vm2, %v301_v38  ;;  %1294 = vmatprep.subr.msk.mxu1 %vm190_vm1, %v397_v39 }
 0x376   :  { %v1374_v40 = vpop.eup %1373 }
 0x377   :  { %v302_v41 = vmul.f32 %v1374_v40, %v1370_v31 }
 0x378   :  { %v395_v42 = vpop.permute.xlu1 %394 }
 0x379   :  { %1292 = vmatmul.mubr.msk.f32.vlgmr.msra.gmra.mxu1 %vm280_vm2, %v302_v41 }
 0x37a   :  { %1295 = vmatpush3.xpose.msk.msra.mxu1 %vm190_vm1, %v397_v39  ;;  %1298 = vmatprep.mubr.msk.f32.mxu1 %vm190_vm1, %v391_v43 }
 0x37b   :  { %1296 = vmatprep.subr.msk.mxu1 %vm190_vm1, %v395_v42 }
 0x37c   :  { %v393_v44 = vpop.permute.xlu1 %392 }
 0x37e   :  { %1297 = vmatpush3.xpose.msk.msra.mxu1 %vm190_vm1, %v395_v42 }
 0x381   :  { %1299 = vmatmul.mubr.msk.f32.vlgmr.msra.gmra.mxu1 %vm190_vm1, %v393_v44 }
 0x439   :  { %v1655_v45 = vpop.f32.mrf.mxu1 }
 0x43b   :  { %v1657_v46 = vpop.f32.mrf.mxu1 }
 0x441   :  { %v1300_v47 = vpop.f32.mrf.mxu1 }
 0x442   :  { %v482_v48 = vmul.f32 0.35355338, %v1300_v47 }
 0x443   :  { %v472_v49 = vpop.f32.mrf.mxu1 }
 0x444   :  { %v481_v50 = vmul.f32 0.35355338, %v472_v49  ;;  %v484_v51 = vadd.f32 %v482_v48, %v1633_v18 }
 0x446   :  { %v488_v52 = vsel %vm280_vm2, %v484_v51, -inf  ;;  %v483_v53 = vadd.f32 %v481_v50, %v1631_v15 }
 0x447   :  { %489 = vmax.xlane.f32.xlu0 %v488_v52 }
 0x448   :  { %v485_v54 = vsel %vm280_vm2, %v483_v53, -inf }
 0x449   :  { %486 = vmax.xlane.f32.xlu1 %v485_v54 }
 0x45a   :  { %509 = vrot.lane.b32.xlu1 %v1608_v6, %s1521_s28 }
 0x45d   :  { %507 = vrot.lane.b32.xlu0 %v1611_v7, %s1521_s28 }
 0x45e   :  { %600 = vrot.lane.b32.xlu1 %v1608_v6, %s1522_s29 }
 0x461   :  { %594 = vrot.lane.b32.xlu0 %v1617_v9, %s1523_s30 }
 0x462   :  { %598 = vrot.lane.b32.xlu1 %v1611_v7, %s1522_s29 }
 0x4d0   :  { %v490_v55 = vpop.xlane.xlu0 %489 }
 0x4d1   :  { %v492_v56 = vsub.f32 %v484_v51, %v490_v55 }
 0x4d2   :  { %v487_v57 = vpop.xlane.xlu1 %486 }
 0x4d3   :  { %v495_v58 = vmul.f32 1.442695, %v492_v56  ;;  %v491_v59 = vsub.f32 %v483_v53, %v487_v57 }
 0x4d4   :  { %v508_v62 = vpop.permute.xlu0 %507 }
 0x4d5   :  { %1375 = vpow2.f32 %v495_v58  ;;  %v493_v60 = vmul.f32 1.442695, %v491_v59 }
 0x4d6   :  { %v510_v61 = vpop.permute.xlu1 %509 }
 0x4d7   :  { %1377 = vpow2.f32 %v493_v60  ;;  %1301 = vmatprep.subr.mxu0 %v510_v61 }
 0x4d8   :  { %1302 = vmatpush3.msra.mxu0 %v510_v61  ;;  %v595_v19 = vpop.permute.xlu0 %594 }
 0x4d9   :  { %1303 = vmatprep.subr.mxu0 %v508_v62 }
 0x4da   :  { %1304 = vmatpush3.msra.mxu0 %v508_v62  ;;  %v601_v63 = vpop.permute.xlu1 %600 }
 0x4db   :  { %1308 = vmatprep.subr.msk.mxu0 %vm190_vm1, %v601_v63 }
 0x4de   :  { %v599_v8 = vpop.permute.xlu1 %598 }
 0x4e2   :  { %v1376_v0 = vpop.eup %1375 }
 0x4e3   :  { %v500_v1 = vsel %vm280_vm2, %v1376_v0, 0.0 }
 0x4e4   :  { %v1378_v3 = vpop.eup %1377  ;;  %501 = vadd.xlane.f32.xlu1 %v500_v1 }
 0x4e5   :  { %v497_v4 = vsel %vm280_vm2, %v1378_v3, 0.0 }
 0x4e8   :  { %498 = vadd.xlane.f32.xlu1 %v497_v4 }
 0x4f9   :  { %596 = vrot.lane.b32.xlu1 %v1627_v12, %s1523_s30 }
 0x56d   :  { %v502_v10 = vpop.xlane.xlu1 %501 }
 0x56e   :  { %1379 = vrcp.f32 %v502_v10 }
 0x571   :  { %v499_v11 = vpop.xlane.xlu1 %498 }
 0x572   :  { %1381 = vrcp.f32 %v499_v11 }
 0x575   :  { %v597_v20 = vpop.permute.xlu1 %596 }
 0x57b   :  { %v1380_v13 = vpop.eup %1379 }
 0x57c   :  { %v506_v17 = vmul.f32 %v1380_v13, %v1376_v0 }
 0x57f   :  { %v1382_v14 = vpop.eup %1381 }
 0x580   :  { %v505_v16 = vmul.f32 %v1382_v14, %v1378_v3 }
 0x582   :  { %1305 = vmatprep.mubr.msk.f32.mxu0 %vm280_vm2, %v505_v16 }
 0x583   :  { %1306 = vmatmul.mubr.msk.f32.vlgmr.msra.gmra.mxu0 %vm280_vm2, %v506_v17 }
 0x584   :  { %1309 = vmatpush3.xpose.msk.msra.mxu0 %vm190_vm1, %v601_v63  ;;  %1312 = vmatprep.mubr.msk.f32.mxu0 %vm190_vm1, %v595_v19 }
 0x585   :  { %1310 = vmatprep.subr.msk.mxu0 %vm190_vm1, %v599_v8 }
 0x588   :  { %1311 = vmatpush3.xpose.msk.msra.mxu0 %vm190_vm1, %v599_v8 }
 0x58b   :  { %1313 = vmatmul.mubr.msk.f32.vlgmr.msra.gmra.mxu0 %vm190_vm1, %v597_v20 }
 0x643   :  { %v1679_v21 = vpop.f32.mrf.mxu0 }
 0x645   :  { %v1681_v22 = vpop.f32.mrf.mxu0 }
 0x64b   :  { %v1314_v23 = vpop.f32.mrf.mxu0 }
 0x64c   :  { %v686_v24 = vmul.f32 0.35355338, %v1314_v23  ;;  %v1035_v23 = vld [vmem:[#allocation7 + $0x10] sm:$0xff] }
 0x64d   :  { %v676_v25 = vpop.f32.mrf.mxu0 }
 0x64e   :  { %v685_v26 = vmul.f32 0.35355338, %v676_v25  ;;  %v688_v27 = vadd.f32 %v686_v24, %v1633_v18  ;;  %v1033_v24 = vld [vmem:[#allocation7] sm:$0xff] }
 0x650   :  { %v692_v28 = vsel %vm280_vm2, %v688_v27, -inf  ;;  %v687_v29 = vadd.f32 %v685_v26, %v1631_v15 }
 0x651   :  { %693 = vmax.xlane.f32.xlu1 %v692_v28 }
 0x652   :  { %v689_v30 = vsel %vm280_vm2, %v687_v29, -inf }
 0x653   :  { %690 = vmax.xlane.f32.xlu0 %v689_v30 }
 0x662   :  { %713 = vrot.lane.b32.xlu1 %v1608_v6, %s1524_s9 }
 0x666   :  { %804 = vrot.lane.b32.xlu1 %v1608_v6, %s1525_s12 }
 0x66a   :  { %802 = vrot.lane.b32.xlu1 %v1611_v7, %s1525_s12 }
 0x66e   :  { %800 = vrot.lane.b32.xlu1 %v1627_v12, %s1526_s13 }
 0x6da   :  { %v694_v31 = vpop.xlane.xlu1 %693 }
 0x6db   :  { %v696_v32 = vsub.f32 %v688_v27, %v694_v31 }
 0x6dc   :  { %v691_v33 = vpop.xlane.xlu0 %690 }
 0x6dd   :  { %v699_v34 = vmul.f32 1.442695, %v696_v32  ;;  %v695_v35 = vsub.f32 %v687_v29, %v691_v33 }
 0x6de   :  { %v714_v36 = vpop.permute.xlu1 %713 }
 0x6df   :  { %1383 = vpow2.f32 %v699_v34  ;;  %v697_v37 = vmul.f32 1.442695, %v695_v35  ;;  %1315 = vmatprep.subr.mxu1 %v714_v36 }
 0x6e0   :  { %1316 = vmatpush3.msra.mxu1 %v714_v36 }
 0x6e1   :  { %1385 = vpow2.f32 %v697_v37 }
 0x6e2   :  { %v805_v44 = vpop.permute.xlu1 %804 }
 0x6ec   :  { %v1384_v38 = vpop.eup %1383 }
 0x6ed   :  { %v704_v39 = vsel %vm280_vm2, %v1384_v38, 0.0 }
 0x6ee   :  { %v1386_v40 = vpop.eup %1385  ;;  %705 = vadd.xlane.f32.xlu0 %v704_v39 }
 0x6ef   :  { %v701_v41 = vsel %vm280_vm2, %v1386_v40, 0.0 }
 0x6f2   :  { %702 = vadd.xlane.f32.xlu0 %v701_v41 }
 0x708   :  { %711 = vrot.lane.b32.xlu0 %v1611_v7, %s1524_s9 }
 0x70c   :  { %798 = vrot.lane.b32.xlu0 %v1617_v9, %s1526_s13  ;;  %v803_v9 = vpop.permute.xlu1 %802 }
 0x710   :  { %v801_v52 = vpop.permute.xlu1 %800 }
 0x777   :  { %v706_v12 = vpop.xlane.xlu0 %705 }
 0x778   :  { %1387 = vrcp.f32 %v706_v12 }
 0x77b   :  { %v703_v42 = vpop.xlane.xlu0 %702 }
 0x77c   :  { %1389 = vrcp.f32 %v703_v42 }
 0x77f   :  { %v712_v43 = vpop.permute.xlu0 %711 }
 0x780   :  { %1317 = vmatprep.subr.mxu1 %v712_v43 }
 0x781   :  { %1318 = vmatpush3.msra.mxu1 %v712_v43 }
 0x782   :  { %1322 = vmatprep.subr.msk.mxu1 %vm190_vm1, %v805_v44 }
 0x783   :  { %v799_v51 = vpop.permute.xlu0 %798 }
 0x785   :  { %v1388_v47 = vpop.eup %1387 }
 0x786   :  { %v710_v50 = vmul.f32 %v1388_v47, %v1384_v38 }
 0x789   :  { %v1390_v48 = vpop.eup %1389 }
 0x78a   :  { %v709_v49 = vmul.f32 %v1390_v48, %v1386_v40 }
 0x78c   :  { %1319 = vmatprep.mubr.msk.f32.mxu1 %vm280_vm2, %v709_v49 }
 0x78d   :  { %1320 = vmatmul.mubr.msk.f32.vlgmr.msra.gmra.mxu1 %vm280_vm2, %v710_v50 }
 0x78e   :  { %1323 = vmatpush3.xpose.msk.msra.mxu1 %vm190_vm1, %v805_v44  ;;  %1326 = vmatprep.mubr.msk.f32.mxu1 %vm190_vm1, %v799_v51 }
 0x78f   :  { %1324 = vmatprep.subr.msk.mxu1 %vm190_vm1, %v803_v9 }
 0x792   :  { %1325 = vmatpush3.xpose.msk.msra.mxu1 %vm190_vm1, %v803_v9 }
 0x795   :  { %1327 = vmatmul.mubr.msk.f32.vlgmr.msra.gmra.mxu1 %vm190_vm1, %v801_v52 }
 0x84d   :  { %v1321_v53 = vpop.f32.mrf.mxu1 }
 0x84f   :  { %v789_v54 = vpop.f32.mrf.mxu1 }
 0x855   :  { %v1328_v55 = vpop.f32.mrf.mxu1 }
 0x856   :  { %v890_v56 = vmul.f32 0.35355338, %v1328_v55 }
 0x857   :  { %v880_v57 = vpop.f32.mrf.mxu1 }
 0x858   :  { %v889_v58 = vmul.f32 0.35355338, %v880_v57  ;;  %v892_v59 = vadd.f32 %v890_v56, %v1633_v18 }
 0x85a   :  { %v891_v60 = vadd.f32 %v889_v58, %v1631_v15  ;;  %v896_v61 = vsel %vm280_vm2, %v892_v59, -inf }
 0x85b   :  { %897 = vmax.xlane.f32.xlu1 %v896_v61  ;;  %v1223_v61 = vld [vmem:[%s1753_s5] ss:$0 sm:$0xff] }
 0x85c   :  { %v893_v62 = vsel %vm280_vm2, %v891_v60, -inf }
 0x85d   :  { %894 = vmax.xlane.f32.xlu0 %v893_v62 }
 0x86c   :  { %917 = vrot.lane.b32.xlu1 %v1608_v6, %s1527_s14 }
 0x870   :  { %1004 = vrot.lane.b32.xlu1 %v1681_v22, %s1514_s11  ;;  %v1036_v22 = vld [vmem:[#allocation7 + $0x18] sm:$0xff] }
 0x874   :  { %1006 = vrot.lane.b32.xlu1 %v1679_v21, %s1514_s11 }
 0x878   :  { %1014 = vrot.lane.b32.xlu1 %v1321_v53, %s1528_s15 }
 0x8e4   :  { %v898_v18 = vpop.xlane.xlu1 %897 }
 0x8e5   :  { %v900_v63 = vsub.f32 %v892_v59, %v898_v18  ;;  %v1224_v18 = vld [vmem:[%s1754_s6] ss:$0 sm:$0xff] }
 0x8e6   :  { %v895_v15 = vpop.xlane.xlu0 %894 }
 0x8e7   :  { %v903_v0 = vmul.f32 1.442695, %v900_v63  ;;  %v899_v1 = vsub.f32 %v891_v60, %v895_v15 }
 0x8e8   :  { %v918_v3 = vpop.permute.xlu1 %917 }
 0x8e9   :  { %1391 = vpow2.f32 %v903_v0  ;;  %v901_v4 = vmul.f32 1.442695, %v899_v1  ;;  %1329 = vmatprep.subr.mxu0 %v918_v3 }
 0x8ea   :  { %1330 = vmatpush3.msra.mxu0 %v918_v3 }
 0x8eb   :  { %1393 = vpow2.f32 %v901_v4 }
 0x8ec   :  { %v1005_v27 = vpop.permute.xlu1 %1004 }
 0x8ed   :  { %v1026_v31 = vsel %vm190_vm1, %v1657_v46, %v1005_v27  ;;  %v1220_v46 = vld [vmem:[%s1752_s4] ss:$0 sm:$0xff] }
 0x8f0   :  { %v1007_v28 = vpop.permute.xlu1 %1006 }
 0x8f1   :  { %v1027_v33 = vsel %vm190_vm1, %v1655_v45, %v1007_v28 }
 0x8f4   :  { %v1015_v29 = vpop.permute.xlu1 %1014 }
 0x8f5   :  { %v1029_v36 = vsel %vm280_vm2, %v1027_v33, %v1015_v29 }
 0x8f6   :  { %v1392_v6 = vpop.eup %1391 }
 0x8f7   :  { %v908_v8 = vsel %vm280_vm2, %v1392_v6, 0.0 }
 0x8f8   :  { %v1394_v10 = vpop.eup %1393  ;;  %909 = vadd.xlane.f32.xlu0 %v908_v8 }
 0x8f9   :  { %v905_v11 = vsel %vm280_vm2, %v1394_v10, 0.0 }
 0x8fc   :  { %906 = vadd.xlane.f32.xlu0 %v905_v11 }
 0x912   :  { %915 = vrot.lane.b32.xlu0 %v1611_v7, %s1527_s14  ;;  %v1034_v7 = vld [vmem:[#allocation7 + $0x8] sm:$0xff] }
 0x916   :  { %1012 = vrot.lane.b32.xlu0 %v789_v54, %s1528_s15 }
 0x981   :  { %v910_v13 = vpop.xlane.xlu0 %909 }
 0x982   :  { %1395 = vrcp.f32 %v910_v13 }
 0x985   :  { %v907_v14 = vpop.xlane.xlu0 %906 }
 0x986   :  { %1397 = vrcp.f32 %v907_v14 }
 0x989   :  { %v916_v16 = vpop.permute.xlu0 %915 }
 0x98a   :  { %1331 = vmatprep.subr.mxu0 %v916_v16 }
 0x98b   :  { %1332 = vmatpush3.msra.mxu0 %v916_v16 }
 0x98c   :  { %1336 = vmatprep.subr.mxu0 %v1036_v22 }
 0x98d   :  { %v1013_v30 = vpop.permute.xlu0 %1012 }
 0x98e   :  { %v1028_v34 = vsel %vm280_vm2, %v1026_v31, %v1013_v30 }
 0x98f   :  { %v1396_v17 = vpop.eup %1395 }
 0x990   :  { %v914_v21 = vmul.f32 %v1396_v17, %v1392_v6 }
 0x993   :  { %v1398_v19 = vpop.eup %1397 }
 0x994   :  { %v913_v20 = vmul.f32 %v1398_v19, %v1394_v10 }
 0x996   :  { %1333 = vmatprep.mubr.msk.f32.mxu0 %vm280_vm2, %v913_v20 }
 0x997   :  { %1334 = vmatmul.mubr.msk.f32.vlgmr.msra.gmra.mxu0 %vm280_vm2, %v914_v21 }
 0x998   :  { %1337 = vmatpush3.msra.mxu0 %v1036_v22 }
 0x999   :  { %1338 = vmatprep.subr.mxu0 %v1035_v23 }
 0x99a   :  { %1339 = vmatpush3.msra.mxu0 %v1035_v23 }
 0x99b   :  { %1340 = vmatprep.subr.mxu0 %v1034_v7 }
 0x99c   :  { %1341 = vmatpush3.msra.mxu0 %v1034_v7 }
 0x99d   :  { %1342 = vmatprep.subr.mxu0 %v1033_v24 }
 0x99e   :  { %1343 = vmatpush3.msra.mxu0 %v1033_v24 }
 0xa57   :  { %v1335_v25 = vpop.f32.mrf.mxu0 }
 0xa58   :  { %1022 = vrot.lane.b32.xlu1 %v1335_v25, %s1529_s16 }
 0xa59   :  { %v993_v26 = vpop.f32.mrf.mxu0 }
 0xa5a   :  { %1020 = vrot.lane.b32.xlu0 %v993_v26, %s1529_s16 }
 0xaca   :  { %v1023_v32 = vpop.permute.xlu1 %1022 }
 0xacb   :  { %v1032_v38 = vsel %vm1030_vm3, %v1029_v36, %v1023_v32 }
 0xacc   :  { %v1021_v35 = vpop.permute.xlu0 %1020 }
 0xacd   :  { %v1031_v37 = vsel %vm1030_vm3, %v1028_v34, %v1021_v35 }
 0xace   :  { %1344 = vmatprep.mubr.msk.f32.mxu0 %vm91_vm0, %v1031_v37 }
 0xacf   :  { %1345 = vmatmul.mubr.msk.f32.vlgmr.msra.gmra.mxu0 %vm91_vm0, %v1032_v38 }
 0xb8f   :  { %v1346_v39 = vpop.f32.mrf.mxu0 }
 0xb90   :  { %v1122_v40 = vadd.f32 %v1346_v39, %v1220_v46 }
 0xb91   :  { %v1116_v41 = vpop.f32.mrf.mxu0 }
 0xb92   :  { %v1117_v12 = vadd.f32 %v1220_v46, %v1116_v41  ;;  %v1126_v45 = vadd.f32 %v1122_v40, %v1604_v5 }
 0xb94   :  { %v1130_v42 = vsel %vm91_vm0, %v1126_v45, 0.0  ;;  %v1125_v43 = vadd.f32 %v1117_v12, %v1600_v2 }
 0xb95   :  { %1131 = vadd.xlane.f32.xlu1 %v1130_v42 }
 0xb96   :  { %v1127_v44 = vsel %vm91_vm0, %v1125_v43, 0.0 }
 0xb97   :  { %1128 = vadd.xlane.f32.xlu0 %v1127_v44 }
 0xc1e   :  { %v1132_v47 = vpop.xlane.xlu1 %1131 }
 0xc1f   :  { %v1135_v48 = vmul.f32 0.03125, %v1132_v47 }
 0xc20   :  { %v1129_v49 = vpop.xlane.xlu0 %1128 }
 0xc21   :  { %v1134_v50 = vmul.f32 0.03125, %v1129_v49  ;;  %v1137_v51 = vsub.f32 %v1126_v45, %v1135_v48 }
 0xc23   :  { %v1136_v9 = vsub.f32 %v1125_v43, %v1134_v50  ;;  %v1139_v54 = vmul.f32 %v1137_v51, %v1137_v51 }
 0xc25   :  { %v1138_v52 = vmul.f32 %v1136_v9, %v1136_v9  ;;  %v1143_v5 = vsel %vm91_vm0, %v1139_v54, 0.0 }
 0xc27   :  { %v1140_v53 = vsel %vm91_vm0, %v1138_v52, 0.0 }
 0xc28   :  { %1141 = vadd.xlane.f32.xlu0 %v1140_v53 }
 0xc2c   :  { %1144 = vadd.xlane.f32.xlu0 %v1143_v5 }
 0xcb1   :  { %v1142_v55 = vpop.xlane.xlu0 %1141 }
 0xcb2   :  { %v1146_v2 = vmul.f32 0.03125, %v1142_v55 }
 0xcb4   :  { %v1148_v56 = vadd.f32 1e-12, %v1146_v2 }
 0xcb5   :  { %v1145_v57 = vpop.xlane.xlu0 %1144 }
 0xcb6   :  { %1399 = vrsqrt.f32 %v1148_v56  ;;  %v1147_v58 = vmul.f32 0.03125, %v1145_v57 }
 0xcb8   :  { %v1149_v59 = vadd.f32 1e-12, %v1147_v58 }
 0xcba   :  { %1401 = vrsqrt.f32 %v1149_v59 }
 0xcc3   :  { %v1400_v60 = vpop.eup %1399 }
 0xcc4   :  { %v1152_v62 = vmul.f32 %v1400_v60, %v1136_v9 }
 0xcc6   :  { %v1161_v63 = vmul.f32 %v1223_v61, %v1152_v62 }
 0xcc7   :  { %v1402_v15 = vpop.eup %1401 }
 0xcc8   :  { %v1153_v0 = vmul.f32 %v1402_v15, %v1137_v51  ;;  %v1170_v1 = vadd.f32 %v1224_v18, %v1161_v63 }
 0xcca   :  { %v1162_v3 = vmul.f32 %v1223_v61, %v1153_v0  ;;  %1172 = vst.msk [vmem:[#allocation10] sm:$0xff] %vm91_vm0, %v1170_v1 }
 0xccc   :  { %v1171_v4 = vadd.f32 %v1224_v18, %v1162_v3 }
 0xcce   :  { %1173 = vst.msk [vmem:[#allocation10 + $0x8] sm:$0xff] %vm91_vm0, %v1171_v4 }
 0xccf   :  { %1494 = shalt.err (!%p1491_p10)
}
 0xcd0   :  { %1185 = dma.vmem_to_hbm [thread:$0]  %s1180_s22, 256, %s1756_s8, [#allocation4], %s1513_s10, %s1513_s10, %s1514_s11  }
 0xcd1   :  { %1509 = dma.done.wait [#allocation4], 256  }
 0xcd2   :  { %1510 = vsyncadd [#allocation4], 4294967040 }
 0xcd3   :  { %1189 = vsyncpa [#allocation3], 1 }
 0xcd4   :  { %1190 = vsyncpa [#allocation6], 1 }
 0xcd5   :  { %1191 = vsyncpa [#allocation9], 1 }
 0xcd6   :  { %1192 = vsyncpa [#allocation4], 1 }

</bundles_post_ra>
